<compile_context>
chip_gen: v6e
topology: v6e:2x2x1
jax: 0.10.0
libtpu: 0.0.40
codegen_flags: <defaults>
</compile_context>

<pallas_src>
import functools

import jax
import jax.numpy as jnp
from jax import lax
from jax.experimental import pallas as pl
from jax.experimental.pallas import tpu as pltpu


# ----------------------------- kernel helpers ------------------------------

def _ln(x, g, b, eps=1e-5):
    # f32 LayerNorm over the last (lane) axis.
    mu = jnp.mean(x, axis=-1, keepdims=True)
    var = jnp.mean(jnp.square(x - mu), axis=-1, keepdims=True)
    return (x - mu) * lax.rsqrt(var + eps) * g + b


def _pick_batch_tile(batch, seq, rows_target=512):
    # Largest divisor Bt of `batch` with Bt*seq <= rows_target (fills the MXU
    # M-dimension), preferring a grid of length >= 2 so the "parallel" batch
    # axis can shard across both TensorCores on v7x.
    divs = [d for d in range(1, batch + 1) if batch % d == 0]
    fits = [d for d in divs if d * seq <= rows_target] or [1]
    best = max(fits)
    pref = [d for d in fits if batch // d >= 2]
    return max(pref) if pref else best


def _block_vmem_limit(bt, seq, width):
    # Explicit VMEM budget for one transformer-block pallas_call (v7x-safe).
    m = bt * seq
    w_bytes = 2 * (width * 3 * width + width * width
                   + width * 4 * width + 4 * width * width)       # bf16 weights (1-buf)
    b_bytes = 4 * (3 * width + 4 * width + 6 * width)             # f32 biases + LN params
    io_bytes = 2 * 2 * m * width * 4                              # x in + out, 2-buffered
    interm = 4 * (m * 3 * width + m * 4 * width + 3 * m * width + bt * seq * seq * 2)
    est = w_bytes + b_bytes + io_bytes + interm
    return int(min(max(2 * est, 32 << 20), 64 << 20))


# ---------------------- fused transformer block kernel ----------------------

def _block_kernel(x_ref, ln1g_ref, ln1b_ref, wqkv_ref, bqkv_ref,
                  wo_ref, bo_ref, ln2g_ref, ln2b_ref,
                  wfc_ref, bfc_ref, wproj_ref, bproj_ref,
                  o_ref, *, heads, bt, seq):
    L = seq
    D = x_ref.shape[-1]
    Hd = D // heads
    M = bt * L
    scale = Hd ** -0.5

    # Batch folded into the matmul M-dimension (leading-axis merge: free).
    x = x_ref[...].reshape(M, D)                       # [M, D] f32 residual stream

    # ---- attention sub-block ----
    xn = _ln(x, ln1g_ref[...], ln1b_ref[...])
    qkv = jnp.dot(xn.astype(jnp.bfloat16), wqkv_ref[...],
                  preferred_element_type=jnp.float32) + bqkv_ref[...]     # [M, 3D] f32

    # additive causal bias, built once (CLIP text transformer is causal);
    # also hides any sequence padding from real query rows.
    qi = lax.broadcasted_iota(jnp.int32, (L, L), 0)
    ki = lax.broadcasted_iota(jnp.int32, (L, L), 1)
    causal_bias = jnp.where(ki <= qi, 0.0, -1e30).astype(jnp.float32)     # [L, L]

    attn = None
    for h in range(heads):                             # static unroll; static slices
        q = (qkv[:, h * Hd:(h + 1) * Hd] * scale).reshape(bt, L, Hd).astype(jnp.bfloat16)
        k = qkv[:, D + h * Hd: D + (h + 1) * Hd].reshape(bt, L, Hd).astype(jnp.bfloat16)
        v = qkv[:, 2 * D + h * Hd: 2 * D + (h + 1) * Hd].reshape(bt, L, Hd).astype(jnp.bfloat16)
        s = jnp.einsum('bqd,bkd->bqk', q, k,
                       preferred_element_type=jnp.float32) + causal_bias  # [bt, L, L]
        s = s - jnp.max(s, axis=-1, keepdims=True)     # f32 softmax
        p = jnp.exp(s)
        p = p * pl.reciprocal(jnp.sum(p, axis=-1, keepdims=True), approx=True)
        ctx = jnp.einsum('bqk,bkd->bqd', p.astype(jnp.bfloat16), v,
                         preferred_element_type=jnp.float32)              # [bt, L, Hd]
        # accumulate heads through row-blocks of W_o: lane-dense [M, D], no concat
        part = jnp.dot(ctx.reshape(M, Hd).astype(jnp.bfloat16),
                       wo_ref[h * Hd:(h + 1) * Hd, :],
                       preferred_element_type=jnp.float32)
        attn = part if attn is None else attn + part
    x = x + attn + bo_ref[...]                         # residual (f32)

    # ---- MLP sub-block (fc -> QuickGELU -> proj) ----
    xn2 = _ln(x, ln2g_ref[...], ln2b_ref[...])
    h1 = jnp.dot(xn2.astype(jnp.bfloat16), wfc_ref[...],
                 preferred_element_type=jnp.float32) + bfc_ref[...]
    h1 = h1 * jax.nn.sigmoid(1.702 * h1)               # QuickGELU in f32
    m = jnp.dot(h1.astype(jnp.bfloat16), wproj_ref[...],
                preferred_element_type=jnp.float32) + bproj_ref[...]
    o_ref[...] = (x + m).reshape(bt, L, D)             # residual (f32)


def transformer_block(x, lyr, *, heads, bt):
    B, L, D = x.shape
    # Weights/biases: constant block index (VMEM resident) + single-buffered.
    def wspec(shape):
        return pl.BlockSpec(shape, lambda b: (0, 0), pipeline_mode=pl.Buffered(1))

    return pl.pallas_call(
        functools.partial(_block_kernel, heads=heads, bt=bt, seq=L),
        out_shape=jax.ShapeDtypeStruct((B, L, D), jnp.float32),
        grid=(B // bt,),
        in_specs=[
            pl.BlockSpec((bt, L, D), lambda b: (b, 0, 0)),                 # x (Bt seqs)
            wspec((1, D)), wspec((1, D)),                                  # ln1 g/b
            wspec((D, 3 * D)), wspec((1, 3 * D)),                          # w/b qkv
            wspec((D, D)), wspec((1, D)),                                  # w/b out-proj
            wspec((1, D)), wspec((1, D)),                                  # ln2 g/b
            wspec((D, 4 * D)), wspec((1, 4 * D)),                          # w/b fc
            wspec((4 * D, D)), wspec((1, D)),                              # w/b proj
        ],
        out_specs=pl.BlockSpec((bt, L, D), lambda b: (b, 0, 0)),
        compiler_params=pltpu.CompilerParams(
            dimension_semantics=("parallel",),
            vmem_limit_bytes=_block_vmem_limit(bt, L, D)),
    )(x, lyr["ln1_g"], lyr["ln1_b"], lyr["w_qkv"], lyr["b_qkv"],
      lyr["w_o"], lyr["b_o"], lyr["ln2_g"], lyr["ln2_b"],
      lyr["w_fc"], lyr["b_fc"], lyr["w_proj"], lyr["b_proj"])


# ------------- fused head: final LN -> (folded proj+classifier) -------------

def _head_kernel(feat_ref, lng_ref, lnb_ref, w_ref, b_ref, o_ref):
    # feat_ref: [B, D] EOT features (already gathered). Single matmul into a
    # 128-lane-padded logits block (lane-dense stores).
    xn = _ln(feat_ref[...], lng_ref[...], lnb_ref[...])
    o_ref[...] = jnp.dot(xn.astype(jnp.bfloat16), w_ref[...],
                         preferred_element_type=jnp.float32) + b_ref[...]


def pooled_head(feats, params):
    B, _ = feats.shape
    Np = params["head_w"].shape[1]
    vmem = pl.BlockSpec(memory_space=pltpu.MemorySpace.VMEM)
    return pl.pallas_call(
        _head_kernel,
        out_shape=jax.ShapeDtypeStruct((B, Np), jnp.float32),
        in_specs=[vmem, vmem, vmem, vmem, vmem],
        out_specs=vmem,
    )(feats, params["ln_f_g"], params["ln_f_b"],
      params["head_w"], params["head_b"])


# ------------------------------ model (glue) -------------------------------

def init_params(key, *, vocab, ctx_len, width, heads, layers, embed_dim, n_output):
    del heads
    bf16 = jnp.bfloat16
    ks = jax.random.split(key, 4 + 4 * layers)
    it = iter(ks)
    tok_emb = 0.02 * jax.random.normal(next(it), (vocab, width), jnp.float32)
    pos_emb = 0.01 * jax.random.normal(next(it), (ctx_len, width), jnp.float32)
    # CLIP text projection (bias-free, width -> embed_dim) and classifier head.
    text_proj = (width ** -0.5) * jax.random.normal(next(it), (width, embed_dim),
                                                    jnp.float32)
    clf_w = 0.02 * jax.random.normal(next(it), (embed_dim, n_output), jnp.float32)
    clf_b = jnp.zeros((n_output,), jnp.float32)
    # Fold text_proj into the classifier (equivalent, bias-free projection) and
    # pad the output lane dim to a multiple of 128 for lane-dense stores.
    n_pad = ((n_output + 127) // 128) * 128
    head_w = jnp.zeros((width, n_pad), jnp.float32).at[:, :n_output].set(text_proj @ clf_w)
    head_b = jnp.zeros((1, n_pad), jnp.float32).at[0, :n_output].set(clf_b)

    p = {
        "tok_emb": tok_emb,
        "pos_emb": pos_emb,
        "ln_f_g": jnp.ones((1, width), jnp.float32),
        "ln_f_b": jnp.zeros((1, width), jnp.float32),
        "head_w": head_w.astype(bf16),          # folded text_proj @ clf_w, padded
        "head_b": head_b,                       # f32, padded
        "layers": [],
    }
    for _ in range(layers):
        k1, k2, k3, k4 = next(it), next(it), next(it), next(it)
        p["layers"].append({
            "ln1_g": jnp.ones((1, width), jnp.float32),
            "ln1_b": jnp.zeros((1, width), jnp.float32),
            "w_qkv": (0.02 * jax.random.normal(k1, (width, 3 * width),
                                               jnp.float32)).astype(bf16),
            "b_qkv": jnp.zeros((1, 3 * width), jnp.float32),
            "w_o": (0.02 * jax.random.normal(k2, (width, width),
                                             jnp.float32)).astype(bf16),
            "b_o": jnp.zeros((1, width), jnp.float32),
            "ln2_g": jnp.ones((1, width), jnp.float32),
            "ln2_b": jnp.zeros((1, width), jnp.float32),
            "w_fc": (0.02 * jax.random.normal(k3, (width, 4 * width),
                                              jnp.float32)).astype(bf16),
            "b_fc": jnp.zeros((1, 4 * width), jnp.float32),
            "w_proj": (0.02 * jax.random.normal(k4, (4 * width, width),
                                                jnp.float32)).astype(bf16),
            "b_proj": jnp.zeros((1, width), jnp.float32),
        })
    return p


def clip_text_classifier_forward(tokens, params, *, heads, n_output):
    B, L = tokens.shape
    D = params["tok_emb"].shape[1]

    # TODO(synk): vocabulary-embedding gather has no clean Pallas tiling; kept
    # as XLA glue (not a hot path).
    x = params["tok_emb"][tokens] + params["pos_emb"][None, :L, :]   # [B, L, D] f32

    # Pad sequence to a sublane multiple of 8; padded key positions are masked
    # from real query rows by causality and padded rows are never read.
    l_pad = ((L + 7) // 8) * 8
    if l_pad != L:
        x = jnp.pad(x, ((0, 0), (0, l_pad - L), (0, 0)))

    bt = _pick_batch_tile(B, l_pad)
    for lyr in params["layers"]:
        x = transformer_block(x, lyr, heads=heads, bt=bt)

    # EOT pooling: CLIP takes features at the token with the highest id.
    # Gather only the B rows in the wrapper (cuts head HBM traffic by L x).
    eot_idx = jnp.argmax(tokens, axis=-1).astype(jnp.int32)
    feats = jnp.take_along_axis(x, eot_idx[:, None, None], axis=1)[:, 0, :]   # [B, D]

    # fused: final LN -> folded (text_proj @ classifier) matmul; slice padding.
    logits_pad = pooled_head(feats, params)
    return logits_pad[:, :n_output]


# --------------------------------- main -------------------------------------

if __name__ == "__main__":
    VOCAB, CTX_LEN, WIDTH, HEADS, LAYERS = 64, 8, 64, 2, 2
    EMBED_DIM, N_OUTPUT, BATCH = 512, 2, 2

    key = jax.random.PRNGKey(0)
    k_tok, k_par = jax.random.split(key)
    tokens = jax.random.randint(k_tok, (BATCH, CTX_LEN), 0, VOCAB, dtype=jnp.int32)
    params = init_params(
        k_par, vocab=VOCAB, ctx_len=CTX_LEN, width=WIDTH, heads=HEADS,
        layers=LAYERS, embed_dim=EMBED_DIM, n_output=N_OUTPUT,
    )

    fwd = jax.jit(functools.partial(clip_text_classifier_forward,
                                    heads=HEADS, n_output=N_OUTPUT))
    logits = jax.block_until_ready(fwd(tokens, params))

    assert logits.shape == (BATCH, N_OUTPUT)
    assert bool(jnp.all(jnp.isfinite(logits)))
    print("KERNEL_OK")
</pallas_src>

<mosaic_0001>
module attributes {stable_mosaic.version = 11 : i64} {
  func.func @_block_kernel(%arg0: i32, %arg1: memref<1x8x64xf32, #tpu.memory_space<vmem>>, %arg2: memref<1x64xf32, #tpu.memory_space<vmem>>, %arg3: memref<1x64xf32, #tpu.memory_space<vmem>>, %arg4: memref<64x192xbf16, #tpu.memory_space<vmem>>, %arg5: memref<1x192xf32, #tpu.memory_space<vmem>>, %arg6: memref<64x64xbf16, #tpu.memory_space<vmem>>, %arg7: memref<1x64xf32, #tpu.memory_space<vmem>>, %arg8: memref<1x64xf32, #tpu.memory_space<vmem>>, %arg9: memref<1x64xf32, #tpu.memory_space<vmem>>, %arg10: memref<64x256xbf16, #tpu.memory_space<vmem>>, %arg11: memref<1x256xf32, #tpu.memory_space<vmem>>, %arg12: memref<256x64xbf16, #tpu.memory_space<vmem>>, %arg13: memref<1x64xf32, #tpu.memory_space<vmem>>, %arg14: memref<1x8x64xf32, #tpu.memory_space<vmem>>) attributes {dimension_semantics = [#tpu.dimension_semantics<parallel>], iteration_bounds = array<i64: 2>, scalar_prefetch = 0 : i64, scratch_operands = 0 : i64, tpu.core_type = #tpu.core_type<tc>, window_params = [{transform_indices = @transform_0, window_bounds = array<i64: 1, 8, 64>}, {pipeline_mode = #tpu.pipeline_mode<synchronous>, transform_indices = @transform_1, window_bounds = array<i64: 1, 64>}, {pipeline_mode = #tpu.pipeline_mode<synchronous>, transform_indices = @transform_2, window_bounds = array<i64: 1, 64>}, {pipeline_mode = #tpu.pipeline_mode<synchronous>, transform_indices = @transform_3, window_bounds = array<i64: 64, 192>}, {pipeline_mode = #tpu.pipeline_mode<synchronous>, transform_indices = @transform_4, window_bounds = array<i64: 1, 192>}, {pipeline_mode = #tpu.pipeline_mode<synchronous>, transform_indices = @transform_5, window_bounds = array<i64: 64, 64>}, {pipeline_mode = #tpu.pipeline_mode<synchronous>, transform_indices = @transform_6, window_bounds = array<i64: 1, 64>}, {pipeline_mode = #tpu.pipeline_mode<synchronous>, transform_indices = @transform_7, window_bounds = array<i64: 1, 64>}, {pipeline_mode = #tpu.pipeline_mode<synchronous>, transform_indices = @transform_8, window_bounds = array<i64: 1, 64>}, {pipeline_mode = #tpu.pipeline_mode<synchronous>, transform_indices = @transform_9, window_bounds = array<i64: 64, 256>}, {pipeline_mode = #tpu.pipeline_mode<synchronous>, transform_indices = @transform_10, window_bounds = array<i64: 1, 256>}, {pipeline_mode = #tpu.pipeline_mode<synchronous>, transform_indices = @transform_11, window_bounds = array<i64: 256, 64>}, {pipeline_mode = #tpu.pipeline_mode<synchronous>, transform_indices = @transform_12, window_bounds = array<i64: 1, 64>}, {transform_indices = @transform_13, window_bounds = array<i64: 1, 8, 64>}]} {
    %c0 = arith.constant 0 : index
    %c0_0 = arith.constant 0 : index
    %c0_1 = arith.constant 0 : index
    %0 = vector.load %arg1[%c0, %c0_0, %c0_1] : memref<1x8x64xf32, #tpu.memory_space<vmem>>, vector<1x8x64xf32>
    %1 = vector.shape_cast %0 : vector<1x8x64xf32> to vector<8x64xf32>
    %c0_2 = arith.constant 0 : index
    %c0_3 = arith.constant 0 : index
    %2 = vector.load %arg2[%c0_2, %c0_3] : memref<1x64xf32, #tpu.memory_space<vmem>>, vector<1x64xf32>
    %c0_4 = arith.constant 0 : index
    %c0_5 = arith.constant 0 : index
    %3 = vector.load %arg3[%c0_4, %c0_5] : memref<1x64xf32, #tpu.memory_space<vmem>>, vector<1x64xf32>
    %cst = arith.constant dense<0.000000e+00> : vector<8xf32>
    %4 = vector.multi_reduction <add>, %1, %cst [1] : vector<8x64xf32> to vector<8xf32>
    %5 = vector.shape_cast %4 : vector<8xf32> to vector<8x1xf32>
    %cst_6 = arith.constant 6.400000e+01 : f32
    %6 = vector.broadcast %cst_6 : f32 to vector<8x1xf32>
    %7 = arith.divf %5, %6 : vector<8x1xf32>
    %8 = vector.broadcast %7 : vector<8x1xf32> to vector<8x64xf32>
    %9 = arith.subf %1, %8 : vector<8x64xf32>
    %10 = arith.mulf %9, %9 : vector<8x64xf32>
    %cst_7 = arith.constant dense<0.000000e+00> : vector<8xf32>
    %11 = vector.multi_reduction <add>, %10, %cst_7 [1] : vector<8x64xf32> to vector<8xf32>
    %12 = vector.shape_cast %11 : vector<8xf32> to vector<8x1xf32>
    %cst_8 = arith.constant 6.400000e+01 : f32
    %13 = vector.broadcast %cst_8 : f32 to vector<8x1xf32>
    %14 = arith.divf %12, %13 : vector<8x1xf32>
    %15 = vector.broadcast %7 : vector<8x1xf32> to vector<8x64xf32>
    %16 = arith.subf %1, %15 : vector<8x64xf32>
    %cst_9 = arith.constant 9.99999974E-6 : f32
    %17 = vector.broadcast %cst_9 : f32 to vector<8x1xf32>
    %18 = arith.addf %14, %17 : vector<8x1xf32>
    %19 = math.rsqrt %18 : vector<8x1xf32>
    %20 = vector.broadcast %19 : vector<8x1xf32> to vector<8x64xf32>
    %21 = arith.mulf %16, %20 : vector<8x64xf32>
    %22 = vector.broadcast %2 : vector<1x64xf32> to vector<8x64xf32>
    %23 = arith.mulf %21, %22 : vector<8x64xf32>
    %24 = vector.broadcast %3 : vector<1x64xf32> to vector<8x64xf32>
    %25 = arith.addf %23, %24 : vector<8x64xf32>
    %26 = arith.truncf %25 : vector<8x64xf32> to vector<8x64xbf16>
    %c0_10 = arith.constant 0 : index
    %c0_11 = arith.constant 0 : index
    %27 = vector.load %arg4[%c0_10, %c0_11] : memref<64x192xbf16, #tpu.memory_space<vmem>>, vector<64x192xbf16>
    %cst_12 = arith.constant dense<0.000000e+00> : vector<8x192xf32>
    %28 = tpu.matmul %26, %27, %cst_12 {dimension_numbers = #tpu.dot_dimension_numbers<[1], [0], [0], [1], [0, 0, 1, 1], [], []>} : vector<8x64xbf16>, vector<64x192xbf16>, vector<8x192xf32> -> vector<8x192xf32>
    %c0_13 = arith.constant 0 : index
    %c0_14 = arith.constant 0 : index
    %29 = vector.load %arg5[%c0_13, %c0_14] : memref<1x192xf32, #tpu.memory_space<vmem>>, vector<1x192xf32>
    %30 = vector.broadcast %29 : vector<1x192xf32> to vector<8x192xf32>
    %31 = arith.addf %28, %30 : vector<8x192xf32>
    %32 = tpu.iota {dimensions = array<i32: 0>} : vector<8x8xi32>
    %33 = tpu.iota {dimensions = array<i32: 1>} : vector<8x8xi32>
    %34 = arith.cmpi sle, %33, %32 : vector<8x8xi32>
    %cst_15 = arith.constant 0.000000e+00 : f32
    %cst_16 = arith.constant -1.000000e+30 : f32
    %35 = vector.broadcast %cst_15 : f32 to vector<8x8xf32>
    %36 = vector.broadcast %cst_16 : f32 to vector<8x8xf32>
    %37 = arith.select %34, %35, %36 : vector<8x8xi1>, vector<8x8xf32>
    %38 = vector.extract_strided_slice %31 {offsets = [0, 0], sizes = [8, 32], strides = [1, 1]} : vector<8x192xf32> to vector<8x32xf32>
    %cst_17 = arith.constant 0.176776692 : f32
    %39 = vector.broadcast %cst_17 : f32 to vector<8x32xf32>
    %40 = arith.mulf %38, %39 : vector<8x32xf32>
    %41 = vector.shape_cast %40 : vector<8x32xf32> to vector<1x8x32xf32>
    %42 = arith.truncf %41 : vector<1x8x32xf32> to vector<1x8x32xbf16>
    %43 = vector.extract_strided_slice %31 {offsets = [0, 64], sizes = [8, 32], strides = [1, 1]} : vector<8x192xf32> to vector<8x32xf32>
    %44 = vector.shape_cast %43 : vector<8x32xf32> to vector<1x8x32xf32>
    %45 = arith.truncf %44 : vector<1x8x32xf32> to vector<1x8x32xbf16>
    %46 = vector.extract_strided_slice %31 {offsets = [0, 128], sizes = [8, 32], strides = [1, 1]} : vector<8x192xf32> to vector<8x32xf32>
    %47 = vector.shape_cast %46 : vector<8x32xf32> to vector<1x8x32xf32>
    %48 = arith.truncf %47 : vector<1x8x32xf32> to vector<1x8x32xbf16>
    "tpu.trace_start"() <{level = 10 : i32, message = "bqd,bkd->bqk"}> : () -> ()
    %cst_18 = arith.constant dense<0.000000e+00> : vector<1x8x8xf32>
    %49 = tpu.matmul %42, %45, %cst_18 {dimension_numbers = #tpu.dot_dimension_numbers<[2], [2], [1], [1], [0, 0, 0, 1, 1, 1], [0], [0]>} : vector<1x8x32xbf16>, vector<1x8x32xbf16>, vector<1x8x8xf32> -> vector<1x8x8xf32>
    "tpu.trace_stop"() : () -> ()
    %50 = vector.shape_cast %37 : vector<8x8xf32> to vector<1x8x8xf32>
    %51 = arith.addf %49, %50 : vector<1x8x8xf32>
    %cst_19 = arith.constant dense<0xFF800000> : vector<1x8xf32>
    %52 = vector.multi_reduction <maximumf>, %51, %cst_19 [2] : vector<1x8x8xf32> to vector<1x8xf32>
    %53 = vector.shape_cast %52 : vector<1x8xf32> to vector<1x8x1xf32>
    %54 = vector.broadcast %53 : vector<1x8x1xf32> to vector<1x8x8xf32>
    %55 = arith.subf %51, %54 : vector<1x8x8xf32>
    %56 = math.exp %55 : vector<1x8x8xf32>
    %cst_20 = arith.constant dense<0.000000e+00> : vector<1x8xf32>
    %57 = vector.multi_reduction <add>, %56, %cst_20 [2] : vector<1x8x8xf32> to vector<1x8xf32>
    %58 = vector.shape_cast %57 : vector<1x8xf32> to vector<1x8x1xf32>
    %59 = tpu.reciprocal %58 {approx = true} : vector<1x8x1xf32> -> vector<1x8x1xf32>
    %60 = vector.broadcast %59 : vector<1x8x1xf32> to vector<1x8x8xf32>
    %61 = arith.mulf %56, %60 : vector<1x8x8xf32>
    %62 = arith.truncf %61 : vector<1x8x8xf32> to vector<1x8x8xbf16>
    "tpu.trace_start"() <{level = 10 : i32, message = "bqk,bkd->bqd"}> : () -> ()
    %cst_21 = arith.constant dense<0.000000e+00> : vector<1x8x32xf32>
    %63 = tpu.matmul %62, %48, %cst_21 {dimension_numbers = #tpu.dot_dimension_numbers<[2], [1], [1], [2], [0, 0, 0, 1, 1, 2], [0], [0]>} : vector<1x8x8xbf16>, vector<1x8x32xbf16>, vector<1x8x32xf32> -> vector<1x8x32xf32>
    "tpu.trace_stop"() : () -> ()
    %64 = vector.shape_cast %63 : vector<1x8x32xf32> to vector<8x32xf32>
    %65 = arith.truncf %64 : vector<8x32xf32> to vector<8x32xbf16>
    %c0_22 = arith.constant 0 : index
    %c0_23 = arith.constant 0 : index
    %66 = vector.load %arg6[%c0_22, %c0_23] : memref<64x64xbf16, #tpu.memory_space<vmem>>, vector<32x64xbf16>
    %cst_24 = arith.constant dense<0.000000e+00> : vector<8x64xf32>
    %67 = tpu.matmul %65, %66, %cst_24 {dimension_numbers = #tpu.dot_dimension_numbers<[1], [0], [0], [1], [0, 0, 1, 1], [], []>} : vector<8x32xbf16>, vector<32x64xbf16>, vector<8x64xf32> -> vector<8x64xf32>
    %68 = vector.extract_strided_slice %31 {offsets = [0, 32], sizes = [8, 32], strides = [1, 1]} : vector<8x192xf32> to vector<8x32xf32>
    %cst_25 = arith.constant 0.176776692 : f32
    %69 = vector.broadcast %cst_25 : f32 to vector<8x32xf32>
    %70 = arith.mulf %68, %69 : vector<8x32xf32>
    %71 = vector.shape_cast %70 : vector<8x32xf32> to vector<1x8x32xf32>
    %72 = arith.truncf %71 : vector<1x8x32xf32> to vector<1x8x32xbf16>
    %73 = vector.extract_strided_slice %31 {offsets = [0, 96], sizes = [8, 32], strides = [1, 1]} : vector<8x192xf32> to vector<8x32xf32>
    %74 = vector.shape_cast %73 : vector<8x32xf32> to vector<1x8x32xf32>
    %75 = arith.truncf %74 : vector<1x8x32xf32> to vector<1x8x32xbf16>
    %76 = vector.extract_strided_slice %31 {offsets = [0, 160], sizes = [8, 32], strides = [1, 1]} : vector<8x192xf32> to vector<8x32xf32>
    %77 = vector.shape_cast %76 : vector<8x32xf32> to vector<1x8x32xf32>
    %78 = arith.truncf %77 : vector<1x8x32xf32> to vector<1x8x32xbf16>
    "tpu.trace_start"() <{level = 10 : i32, message = "bqd,bkd->bqk"}> : () -> ()
    %cst_26 = arith.constant dense<0.000000e+00> : vector<1x8x8xf32>
    %79 = tpu.matmul %72, %75, %cst_26 {dimension_numbers = #tpu.dot_dimension_numbers<[2], [2], [1], [1], [0, 0, 0, 1, 1, 1], [0], [0]>} : vector<1x8x32xbf16>, vector<1x8x32xbf16>, vector<1x8x8xf32> -> vector<1x8x8xf32>
    "tpu.trace_stop"() : () -> ()
    %80 = vector.shape_cast %37 : vector<8x8xf32> to vector<1x8x8xf32>
    %81 = arith.addf %79, %80 : vector<1x8x8xf32>
    %cst_27 = arith.constant dense<0xFF800000> : vector<1x8xf32>
    %82 = vector.multi_reduction <maximumf>, %81, %cst_27 [2] : vector<1x8x8xf32> to vector<1x8xf32>
    %83 = vector.shape_cast %82 : vector<1x8xf32> to vector<1x8x1xf32>
    %84 = vector.broadcast %83 : vector<1x8x1xf32> to vector<1x8x8xf32>
    %85 = arith.subf %81, %84 : vector<1x8x8xf32>
    %86 = math.exp %85 : vector<1x8x8xf32>
    %cst_28 = arith.constant dense<0.000000e+00> : vector<1x8xf32>
    %87 = vector.multi_reduction <add>, %86, %cst_28 [2] : vector<1x8x8xf32> to vector<1x8xf32>
    %88 = vector.shape_cast %87 : vector<1x8xf32> to vector<1x8x1xf32>
    %89 = tpu.reciprocal %88 {approx = true} : vector<1x8x1xf32> -> vector<1x8x1xf32>
    %90 = vector.broadcast %89 : vector<1x8x1xf32> to vector<1x8x8xf32>
    %91 = arith.mulf %86, %90 : vector<1x8x8xf32>
    %92 = arith.truncf %91 : vector<1x8x8xf32> to vector<1x8x8xbf16>
    "tpu.trace_start"() <{level = 10 : i32, message = "bqk,bkd->bqd"}> : () -> ()
    %cst_29 = arith.constant dense<0.000000e+00> : vector<1x8x32xf32>
    %93 = tpu.matmul %92, %78, %cst_29 {dimension_numbers = #tpu.dot_dimension_numbers<[2], [1], [1], [2], [0, 0, 0, 1, 1, 2], [0], [0]>} : vector<1x8x8xbf16>, vector<1x8x32xbf16>, vector<1x8x32xf32> -> vector<1x8x32xf32>
    "tpu.trace_stop"() : () -> ()
    %94 = vector.shape_cast %93 : vector<1x8x32xf32> to vector<8x32xf32>
    %95 = arith.truncf %94 : vector<8x32xf32> to vector<8x32xbf16>
    %c32 = arith.constant 32 : index
    %c0_30 = arith.constant 0 : index
    %96 = vector.load %arg6[%c32, %c0_30] : memref<64x64xbf16, #tpu.memory_space<vmem>>, vector<32x64xbf16>
    %cst_31 = arith.constant dense<0.000000e+00> : vector<8x64xf32>
    %97 = tpu.matmul %95, %96, %cst_31 {dimension_numbers = #tpu.dot_dimension_numbers<[1], [0], [0], [1], [0, 0, 1, 1], [], []>} : vector<8x32xbf16>, vector<32x64xbf16>, vector<8x64xf32> -> vector<8x64xf32>
    %98 = arith.addf %67, %97 : vector<8x64xf32>
    %99 = arith.addf %1, %98 : vector<8x64xf32>
    %c0_32 = arith.constant 0 : index
    %c0_33 = arith.constant 0 : index
    %100 = vector.load %arg7[%c0_32, %c0_33] : memref<1x64xf32, #tpu.memory_space<vmem>>, vector<1x64xf32>
    %101 = vector.broadcast %100 : vector<1x64xf32> to vector<8x64xf32>
    %102 = arith.addf %99, %101 : vector<8x64xf32>
    %c0_34 = arith.constant 0 : index
    %c0_35 = arith.constant 0 : index
    %103 = vector.load %arg8[%c0_34, %c0_35] : memref<1x64xf32, #tpu.memory_space<vmem>>, vector<1x64xf32>
    %c0_36 = arith.constant 0 : index
    %c0_37 = arith.constant 0 : index
    %104 = vector.load %arg9[%c0_36, %c0_37] : memref<1x64xf32, #tpu.memory_space<vmem>>, vector<1x64xf32>
    %cst_38 = arith.constant dense<0.000000e+00> : vector<8xf32>
    %105 = vector.multi_reduction <add>, %102, %cst_38 [1] : vector<8x64xf32> to vector<8xf32>
    %106 = vector.shape_cast %105 : vector<8xf32> to vector<8x1xf32>
    %cst_39 = arith.constant 6.400000e+01 : f32
    %107 = vector.broadcast %cst_39 : f32 to vector<8x1xf32>
    %108 = arith.divf %106, %107 : vector<8x1xf32>
    %109 = vector.broadcast %108 : vector<8x1xf32> to vector<8x64xf32>
    %110 = arith.subf %102, %109 : vector<8x64xf32>
    %111 = arith.mulf %110, %110 : vector<8x64xf32>
    %cst_40 = arith.constant dense<0.000000e+00> : vector<8xf32>
    %112 = vector.multi_reduction <add>, %111, %cst_40 [1] : vector<8x64xf32> to vector<8xf32>
    %113 = vector.shape_cast %112 : vector<8xf32> to vector<8x1xf32>
    %cst_41 = arith.constant 6.400000e+01 : f32
    %114 = vector.broadcast %cst_41 : f32 to vector<8x1xf32>
    %115 = arith.divf %113, %114 : vector<8x1xf32>
    %116 = vector.broadcast %108 : vector<8x1xf32> to vector<8x64xf32>
    %117 = arith.subf %102, %116 : vector<8x64xf32>
    %cst_42 = arith.constant 9.99999974E-6 : f32
    %118 = vector.broadcast %cst_42 : f32 to vector<8x1xf32>
    %119 = arith.addf %115, %118 : vector<8x1xf32>
    %120 = math.rsqrt %119 : vector<8x1xf32>
    %121 = vector.broadcast %120 : vector<8x1xf32> to vector<8x64xf32>
    %122 = arith.mulf %117, %121 : vector<8x64xf32>
    %123 = vector.broadcast %103 : vector<1x64xf32> to vector<8x64xf32>
    %124 = arith.mulf %122, %123 : vector<8x64xf32>
    %125 = vector.broadcast %104 : vector<1x64xf32> to vector<8x64xf32>
    %126 = arith.addf %124, %125 : vector<8x64xf32>
    %127 = arith.truncf %126 : vector<8x64xf32> to vector<8x64xbf16>
    %c0_43 = arith.constant 0 : index
    %c0_44 = arith.constant 0 : index
    %128 = vector.load %arg10[%c0_43, %c0_44] : memref<64x256xbf16, #tpu.memory_space<vmem>>, vector<64x256xbf16>
    %cst_45 = arith.constant dense<0.000000e+00> : vector<8x256xf32>
    %129 = tpu.matmul %127, %128, %cst_45 {dimension_numbers = #tpu.dot_dimension_numbers<[1], [0], [0], [1], [0, 0, 1, 1], [], []>} : vector<8x64xbf16>, vector<64x256xbf16>, vector<8x256xf32> -> vector<8x256xf32>
    %c0_46 = arith.constant 0 : index
    %c0_47 = arith.constant 0 : index
    %130 = vector.load %arg11[%c0_46, %c0_47] : memref<1x256xf32, #tpu.memory_space<vmem>>, vector<1x256xf32>
    %131 = vector.broadcast %130 : vector<1x256xf32> to vector<8x256xf32>
    %132 = arith.addf %129, %131 : vector<8x256xf32>
    %cst_48 = arith.constant 1.702000e+00 : f32
    %133 = vector.broadcast %cst_48 : f32 to vector<8x256xf32>
    %134 = arith.mulf %133, %132 : vector<8x256xf32>
    %135 = arith.negf %134 : vector<8x256xf32>
    %136 = math.exp %135 : vector<8x256xf32>
    %cst_49 = arith.constant 1.000000e+00 : f32
    %137 = vector.broadcast %cst_49 : f32 to vector<8x256xf32>
    %138 = arith.addf %137, %136 : vector<8x256xf32>
    %139 = arith.divf %137, %138 : vector<8x256xf32>
    %140 = arith.mulf %132, %139 : vector<8x256xf32>
    %141 = arith.truncf %140 : vector<8x256xf32> to vector<8x256xbf16>
    %c0_50 = arith.constant 0 : index
    %c0_51 = arith.constant 0 : index
    %142 = vector.load %arg12[%c0_50, %c0_51] : memref<256x64xbf16, #tpu.memory_space<vmem>>, vector<256x64xbf16>
    %cst_52 = arith.constant dense<0.000000e+00> : vector<8x64xf32>
    %143 = tpu.matmul %141, %142, %cst_52 {dimension_numbers = #tpu.dot_dimension_numbers<[1], [0], [0], [1], [0, 0, 1, 1], [], []>} : vector<8x256xbf16>, vector<256x64xbf16>, vector<8x64xf32> -> vector<8x64xf32>
    %c0_53 = arith.constant 0 : index
    %c0_54 = arith.constant 0 : index
    %144 = vector.load %arg13[%c0_53, %c0_54] : memref<1x64xf32, #tpu.memory_space<vmem>>, vector<1x64xf32>
    %145 = vector.broadcast %144 : vector<1x64xf32> to vector<8x64xf32>
    %146 = arith.addf %143, %145 : vector<8x64xf32>
    %147 = arith.addf %102, %146 : vector<8x64xf32>
    %148 = vector.shape_cast %147 : vector<8x64xf32> to vector<1x8x64xf32>
    %c0_55 = arith.constant 0 : index
    %c0_56 = arith.constant 0 : index
    %c0_57 = arith.constant 0 : index
    %149 = vector.load %arg14[%c0_55, %c0_56, %c0_57] : memref<1x8x64xf32, #tpu.memory_space<vmem>>, vector<1x8x64xf32>
    tpu.vector_store %arg14[%c0_55, %c0_56, %c0_57], %148 {strides = array<i32>} : memref<1x8x64xf32, #tpu.memory_space<vmem>>, vector<1x8x64xf32>,
    return
  }
  func.func @transform_0(%arg0: i32) -> (i32, i32, i32) {
    %c0_i32 = arith.constant 0 : i32
    %c0_i32_0 = arith.constant 0 : i32
    %c0_i32_1 = arith.constant 0 : i32
    return %arg0, %c0_i32, %c0_i32_0 : i32, i32, i32
  }
  func.func @transform_1(%arg0: i32) -> (i32, i32) {
    %c0_i32 = arith.constant 0 : i32
    %c0_i32_0 = arith.constant 0 : i32
    %c0_i32_1 = arith.constant 0 : i32
    return %c0_i32, %c0_i32_0 : i32, i32
  }
  func.func @transform_2(%arg0: i32) -> (i32, i32) {
    %c0_i32 = arith.constant 0 : i32
    %c0_i32_0 = arith.constant 0 : i32
    %c0_i32_1 = arith.constant 0 : i32
    return %c0_i32, %c0_i32_0 : i32, i32
  }
  func.func @transform_3(%arg0: i32) -> (i32, i32) {
    %c0_i32 = arith.constant 0 : i32
    %c0_i32_0 = arith.constant 0 : i32
    %c0_i32_1 = arith.constant 0 : i32
    return %c0_i32, %c0_i32_0 : i32, i32
  }
  func.func @transform_4(%arg0: i32) -> (i32, i32) {
    %c0_i32 = arith.constant 0 : i32
    %c0_i32_0 = arith.constant 0 : i32
    %c0_i32_1 = arith.constant 0 : i32
    return %c0_i32, %c0_i32_0 : i32, i32
  }
  func.func @transform_5(%arg0: i32) -> (i32, i32) {
    %c0_i32 = arith.constant 0 : i32
    %c0_i32_0 = arith.constant 0 : i32
    %c0_i32_1 = arith.constant 0 : i32
    return %c0_i32, %c0_i32_0 : i32, i32
  }
  func.func @transform_6(%arg0: i32) -> (i32, i32) {
    %c0_i32 = arith.constant 0 : i32
    %c0_i32_0 = arith.constant 0 : i32
    %c0_i32_1 = arith.constant 0 : i32
    return %c0_i32, %c0_i32_0 : i32, i32
  }
  func.func @transform_7(%arg0: i32) -> (i32, i32) {
    %c0_i32 = arith.constant 0 : i32
    %c0_i32_0 = arith.constant 0 : i32
    %c0_i32_1 = arith.constant 0 : i32
    return %c0_i32, %c0_i32_0 : i32, i32
  }
  func.func @transform_8(%arg0: i32) -> (i32, i32) {
    %c0_i32 = arith.constant 0 : i32
    %c0_i32_0 = arith.constant 0 : i32
    %c0_i32_1 = arith.constant 0 : i32
    return %c0_i32, %c0_i32_0 : i32, i32
  }
  func.func @transform_9(%arg0: i32) -> (i32, i32) {
    %c0_i32 = arith.constant 0 : i32
    %c0_i32_0 = arith.constant 0 : i32
    %c0_i32_1 = arith.constant 0 : i32
    return %c0_i32, %c0_i32_0 : i32, i32
  }
  func.func @transform_10(%arg0: i32) -> (i32, i32) {
    %c0_i32 = arith.constant 0 : i32
    %c0_i32_0 = arith.constant 0 : i32
    %c0_i32_1 = arith.constant 0 : i32
    return %c0_i32, %c0_i32_0 : i32, i32
  }
  func.func @transform_11(%arg0: i32) -> (i32, i32) {
    %c0_i32 = arith.constant 0 : i32
    %c0_i32_0 = arith.constant 0 : i32
    %c0_i32_1 = arith.constant 0 : i32
    return %c0_i32, %c0_i32_0 : i32, i32
  }
  func.func @transform_12(%arg0: i32) -> (i32, i32) {
    %c0_i32 = arith.constant 0 : i32
    %c0_i32_0 = arith.constant 0 : i32
    %c0_i32_1 = arith.constant 0 : i32
    return %c0_i32, %c0_i32_0 : i32, i32
  }
  func.func @transform_13(%arg0: i32) -> (i32, i32, i32) {
    %c0_i32 = arith.constant 0 : i32
    %c0_i32_0 = arith.constant 0 : i32
    %c0_i32_1 = arith.constant 0 : i32
    return %arg0, %c0_i32, %c0_i32_0 : i32, i32, i32
  }
}

module attributes {stable_mosaic.version = 11 : i64} {
  func.func @_head_kernel(%arg0: memref<2x64xf32, #tpu.memory_space<vmem>>, %arg1: memref<1x64xf32, #tpu.memory_space<vmem>>, %arg2: memref<1x64xf32, #tpu.memory_space<vmem>>, %arg3: memref<64x128xbf16, #tpu.memory_space<vmem>>, %arg4: memref<1x128xf32, #tpu.memory_space<vmem>>, %arg5: memref<2x128xf32, #tpu.memory_space<vmem>>) attributes {dimension_semantics = [], scalar_prefetch = 0 : i64, scratch_operands = 0 : i64, tpu.core_type = #tpu.core_type<tc>} {
    %c0 = arith.constant 0 : index
    %c0_0 = arith.constant 0 : index
    %0 = vector.load %arg0[%c0, %c0_0] : memref<2x64xf32, #tpu.memory_space<vmem>>, vector<2x64xf32>
    %c0_1 = arith.constant 0 : index
    %c0_2 = arith.constant 0 : index
    %1 = vector.load %arg1[%c0_1, %c0_2] : memref<1x64xf32, #tpu.memory_space<vmem>>, vector<1x64xf32>
    %c0_3 = arith.constant 0 : index
    %c0_4 = arith.constant 0 : index
    %2 = vector.load %arg2[%c0_3, %c0_4] : memref<1x64xf32, #tpu.memory_space<vmem>>, vector<1x64xf32>
    %cst = arith.constant dense<0.000000e+00> : vector<2xf32>
    %3 = vector.multi_reduction <add>, %0, %cst [1] : vector<2x64xf32> to vector<2xf32>
    %4 = vector.shape_cast %3 : vector<2xf32> to vector<2x1xf32>
    %cst_5 = arith.constant 6.400000e+01 : f32
    %5 = vector.broadcast %cst_5 : f32 to vector<2x1xf32>
    %6 = arith.divf %4, %5 : vector<2x1xf32>
    %7 = vector.broadcast %6 : vector<2x1xf32> to vector<2x64xf32>
    %8 = arith.subf %0, %7 : vector<2x64xf32>
    %9 = arith.mulf %8, %8 : vector<2x64xf32>
    %cst_6 = arith.constant dense<0.000000e+00> : vector<2xf32>
    %10 = vector.multi_reduction <add>, %9, %cst_6 [1] : vector<2x64xf32> to vector<2xf32>
    %11 = vector.shape_cast %10 : vector<2xf32> to vector<2x1xf32>
    %cst_7 = arith.constant 6.400000e+01 : f32
    %12 = vector.broadcast %cst_7 : f32 to vector<2x1xf32>
    %13 = arith.divf %11, %12 : vector<2x1xf32>
    %14 = vector.broadcast %6 : vector<2x1xf32> to vector<2x64xf32>
    %15 = arith.subf %0, %14 : vector<2x64xf32>
    %cst_8 = arith.constant 9.99999974E-6 : f32
    %16 = vector.broadcast %cst_8 : f32 to vector<2x1xf32>
    %17 = arith.addf %13, %16 : vector<2x1xf32>
    %18 = math.rsqrt %17 : vector<2x1xf32>
    %19 = vector.broadcast %18 : vector<2x1xf32> to vector<2x64xf32>
    %20 = arith.mulf %15, %19 : vector<2x64xf32>
    %21 = vector.broadcast %1 : vector<1x64xf32> to vector<2x64xf32>
    %22 = arith.mulf %20, %21 : vector<2x64xf32>
    %23 = vector.broadcast %2 : vector<1x64xf32> to vector<2x64xf32>
    %24 = arith.addf %22, %23 : vector<2x64xf32>
    %25 = arith.truncf %24 : vector<2x64xf32> to vector<2x64xbf16>
    %c0_9 = arith.constant 0 : index
    %c0_10 = arith.constant 0 : index
    %26 = vector.load %arg3[%c0_9, %c0_10] : memref<64x128xbf16, #tpu.memory_space<vmem>>, vector<64x128xbf16>
    %cst_11 = arith.constant dense<0.000000e+00> : vector<2x128xf32>
    %27 = tpu.matmul %25, %26, %cst_11 {dimension_numbers = #tpu.dot_dimension_numbers<[1], [0], [0], [1], [0, 0, 1, 1], [], []>} : vector<2x64xbf16>, vector<64x128xbf16>, vector<2x128xf32> -> vector<2x128xf32>
    %c0_12 = arith.constant 0 : index
    %c0_13 = arith.constant 0 : index
    %28 = vector.load %arg4[%c0_12, %c0_13] : memref<1x128xf32, #tpu.memory_space<vmem>>, vector<1x128xf32>
    %29 = vector.broadcast %28 : vector<1x128xf32> to vector<2x128xf32>
    %30 = arith.addf %27, %29 : vector<2x128xf32>
    %c0_14 = arith.constant 0 : index
    %c0_15 = arith.constant 0 : index
    %31 = vector.load %arg5[%c0_14, %c0_15] : memref<2x128xf32, #tpu.memory_space<vmem>>, vector<2x128xf32>
    tpu.vector_store %arg5[%c0_14, %c0_15], %30 {strides = array<i32>} : memref<2x128xf32, #tpu.memory_space<vmem>>, vector<2x128xf32>,
    return
  }
}

</mosaic_0001>

<bundles_post_ra>
// kernel: clip_text_classifier_forward.5
= control target key start
LH: loop header
LB: loop body
LE: loop exit
PB: predicated region body
PF: predicated region fallthrough
CT: control target
= control target key end

     0   :  { %vm25_vm0 = vcmask 517120   ;;  %s269_s0 = inlined_call_operand.vmem [shape: f32[2,64], index: 0, kind: input, shape index: {}]   ;;  %s270_s1 = inlined_call_operand.vmem [shape: f32[1,64], index: 1, kind: input, shape index: {}]   ;;  %s271_s2 = inlined_call_operand.vmem [shape: f32[1,64], index: 2, kind: input, shape index: {}]   ;;  %s272_s3 = inlined_call_operand.vmem [shape: bf16[64,128], index: 3, kind: input, shape index: {}]   ;;  %s273_s4 = inlined_call_operand.vmem [shape: f32[1,128], index: 4, kind: input, shape index: {}]   ;;  %s274_s5 = inlined_call_operand.hbm [shape: f32[2,128], index: 5, kind: output, shape index: {}]  }
   0x1   :  { %v22_v0 = vld [vmem:[%s269_s0] sm:$0x3] }
   0x2   :  { %v26_v1 = vsel %vm25_vm0, %v22_v0, 0.0 }
   0x3   :  { %27 = vadd.xlane.f32.xlu0 %v26_v1 }
   0x4   :  { %10 = vsyncpa [#allocation3], 0  ;;  %v181_v7 = vld [vmem:[%s272_s3 + $0x18] sm:$0xff]   ;;  %v209_v8 = vmov 0.0   ;;  %vm210_vm1 = vmmov 0   ;;  %v182_v9 = vld [vmem:[%s272_s3 + $0x10] sm:$0xff]  }
   0x5   :  { %166 = vmatprep.subr.bf16.mxu0 %v209_v8  ;;  %174 = vmatprep.mubr.msk.bf16.mxu0 %vm210_vm1, %v209_v8  ;;  %v183_v10 = vld [vmem:[%s272_s3 + $0x8] sm:$0xff]   ;;  %v184_v11 = vld [vmem:[%s272_s3] sm:$0xff]   ;;  %vm94_vm2 = vcmask 523264   ;;  %s211_s7 = smov [#allocation2]  }
   0x6   :  { %167 = vmatpush3.bf16.msra.mxu0 %v181_v7  ;;  %v153_v16 = vld [vmem:[%s270_s1] ss:$0 sm:$0xff]  ;;  %s145_s8 = sshll.u32 %s211_s7, 4  ;;  %s146_s8 = int_to_ptr.vmem [resolvable:$true] %s145_s8 }
   0x7   :  { %168 = vmatprep.subr.bf16.mxu0 %v209_v8  ;;  %v154_v18 = vld [vmem:[%s271_s2] ss:$0 sm:$0xff]  ;;  %s187_s1 = scalar_lea.vmem %s146_s8, 32  ;;  %p192_p1 = scmp.lt.s32.totalorder %s146_s8, %s146_s8 }
   0x8   :  { %v155_v22 = vld [vmem:[%s273_s4] ss:$0 sm:$0xff]  ;;  %p188_p0 = scmp.ne.s32.totalorder %s146_s8, %s187_s1  ;;  %p193_p2 = scmp.lt.s32.totalorder %s187_s1, %s187_s1 }
   0xa   :  { %169 = vmatpush3.bf16.msra.mxu0 %v182_v9  ;;  %p194_p3 = por %p193_p2, %p192_p1 }
   0xb   :  { %170 = vmatprep.subr.bf16.mxu0 %v209_v8 }
   0xc   :  { %p195_p4 = pnand %p194_p3, %p188_p0 }
   0xe   :  { %171 = vmatpush3.bf16.msra.mxu0 %v183_v10 }
   0xf   :  { %172 = vmatprep.subr.bf16.mxu0 %v209_v8 }
  0x12   :  { %173 = vmatpush3.bf16.msra.mxu0 %v184_v11 }
  0x8c   :  { %v28_v2 = vpop.xlane.xlu0 %27 }
  0x8d   :  { %v30_v3 = vmul.f32 0.015625, %v28_v2 }
  0x8f   :  { %v31_v4 = vsub.f32 %v22_v0, %v30_v3 }
  0x91   :  { %v32_v5 = vmul.f32 %v31_v4, %v31_v4 }
  0x93   :  { %v33_v6 = vsel %vm25_vm0, %v32_v5, 0.0 }
  0x94   :  { %34 = vadd.xlane.f32.xlu0 %v33_v6 }
 0x11d   :  { %v35_v12 = vpop.xlane.xlu0 %34 }
 0x11e   :  { %v36_v13 = vmul.f32 0.015625, %v35_v12 }
 0x120   :  { %v37_v14 = vadd.f32 1e-05, %v36_v13 }
 0x122   :  { %185 = vrsqrt.f32 %v37_v14 }
 0x12f   :  { %v186_v15 = vpop.eup %185 }
 0x130   :  { %v39_v17 = vmul.f32 %v186_v15, %v31_v4 }
 0x132   :  { %v46_v19 = vmul.f32 %v153_v16, %v39_v17 }
 0x134   :  { %v53_v20 = vadd.f32 %v154_v18, %v46_v19 }
 0x136   :  { %v54_v21 = vpack.c.bf16 %v53_v20, %v53_v20 }
 0x138   :  { %175 = vmatmul.mubr.msk.bf16.vlgmr.msra.gmra.mxu0 %vm94_vm2, %v54_v21 }
 0x1f8   :  { %v132_v23 = vpop.f32.mrf.mxu0 }
 0x1f9   :  { %v133_v24 = vadd.f32 %v155_v22, %v132_v23 }
 0x1fa   :  { %v176_v25 = vpop.f32.mrf.mxu0 }
 0x1fb   :  { %138 = vst [vmem:[#allocation2] sm:$0x3] %v133_v24 }
 0x1fc   :  { %v135_v26 = vpop.f32.mrf.mxu0 }
 0x1fd   :  { %198 = shalt.err (!%p195_p4)
}
 0x1fe   :  { %148 = dma.vmem_to_hbm [thread:$0]  %s146_s8, 32, %s274_s5, [#allocation3]   ;;  %v177_v27 = vpop.f32.mrf.mxu0 }
 0x1ff   :  { %207 = dma.done.wait [#allocation3], 32  }
 0x200   :  { %208 = vsyncadd [#allocation3], 4294967264 }
 0x201   :  { %152 = vsyncpa [#allocation3], 1 }

// kernel: clip_text_classifier_forward.3
= control target key start
LH: loop header
LB: loop body
LE: loop exit
PB: predicated region body
PF: predicated region fallthrough
CT: control target
= control target key end

     0   :  { %s1618_s25 = smov 0   ;;  %s1842_s0 = inlined_call_operand.vmem [shape: f32[2,8,64], index: 0, kind: input, shape index: {}]   ;;  %s1843_s1 = inlined_call_operand.vmem [shape: f32[1,64], index: 1, kind: input, shape index: {}]   ;;  %s1844_s2 = inlined_call_operand.vmem [shape: f32[1,64], index: 2, kind: input, shape index: {}]   ;;  %s1845_s3 = inlined_call_operand.vmem [shape: bf16[64,192], index: 3, kind: input, shape index: {}]   ;;  %s1846_s4 = inlined_call_operand.vmem [shape: f32[1,192], index: 4, kind: input, shape index: {}]   ;;  %s1847_s5 = inlined_call_operand.vmem [shape: bf16[64,64], index: 5, kind: input, shape index: {}]   ;;  %s1848_s6 = inlined_call_operand.vmem [shape: f32[1,64], index: 6, kind: input, shape index: {}]   ;;  %s1849_s7 = inlined_call_operand.vmem [shape: f32[1,64], index: 7, kind: input, shape index: {}]   ;;  %s1850_s8 = inlined_call_operand.vmem [shape: f32[1,64], index: 8, kind: input, shape index: {}]   ;;  %s1851_s9 = inlined_call_operand.vmem [shape: bf16[64,256], index: 9, kind: input, shape index: {}]   ;;  %s1852_s10 = inlined_call_operand.vmem [shape: f32[1,256], index: 10, kind: input, shape index: {}]   ;;  %s1853_s11 = inlined_call_operand.vmem [shape: bf16[256,64], index: 11, kind: input, shape index: {}]   ;;  %s1854_s12 = inlined_call_operand.vmem [shape: f32[1,64], index: 12, kind: input, shape index: {}]   ;;  %s1855_s13 = inlined_call_operand.vmem [shape: f32[2,8,64], index: 13, kind: output, shape index: {}]  }
   0x1 LB: > { %s1317_s26 = sadd.s32 4294967295, %s1539_s25   ;;  %p1321_p0 = scmp.ge.s32.totalorder %s1539_s25, 1  ;;  %s1539_s25 = sphi %s1618_s25, %s23_s25  }
   0x2   : > { %p386_p1 = scmp.lt.s32.totalorder %s1539_s25, 3 }
   0x4   : > { %p387_p2 = pnand %p1321_p0, %p386_p1 }
   0x5   : > { %p428_p3 = scmp.lt.s32.totalorder (!%p387_p2), %s1317_s26, 1  ;;  %s1544_s22 = smov (!%p387_p2), 64  }
   0x6   : > { %390 = sbr.rel (%p387_p2) target bundleno = 2304 (0x900), region = 72  ;;  %s1545_s23 = smov (!%p387_p2), 96  }
   0x7   : > { %s1546_s24 = smov (!%p387_p2), 32  }
   0xb   : > { %s1857_s26 = smov (!%p428_p3, %s1317_s26), 1  ;;  %vm440_vm0 = vcmask 523264   ;;  %v1469_v7 = vld [vmem:[%s1845_s3 + $0x34] ss:$8 sps:$4 sm:$0xff]   ;;  %v1471_v8 = vld [vmem:[%s1845_s3 + $0x30] ss:$8 sps:$4 sm:$0xff]   ;;  %v480_v27 = vlaneseq }
   0xc   : > { %s1322_s27 = sshll.u32 %s1857_s26, 3  ;;  %v1472_v9 = vld [vmem:[%s1845_s3 + $0x24] ss:$8 sps:$4 sm:$0xff]   ;;  %541 = vmatprep.subr.bf16.mxu0 %v1469_v7  ;;  %v1474_v10 = vld [vmem:[%s1845_s3 + $0x20] ss:$8 sps:$4 sm:$0xff]   ;;  %v1541_v11 = vmov 0  }
   0xd   : > { %s431_s30 = scalar_lea.vmem %s1842_s0, %s1322_s27  ;;  %542 = vmatpush1.bf16.msra.mxu0 %v1471_v8  ;;  %565 = vmatprep.mubr.bf16.mxu0 %v1541_v11  ;;  %v1475_v12 = vld [vmem:[%s1845_s3 + $0x14] ss:$8 sps:$4 sm:$0xff]   ;;  %v1477_v13 = vld [vmem:[%s1845_s3 + $0x10] ss:$8 sps:$4 sm:$0xff]   ;;  %v1478_v14 = vld [vmem:[%s1845_s3 + $0x4] ss:$8 sps:$4 sm:$0xff]  }
   0xe   : > { %v1634_v0 = vld [vmem:[%s431_s30] sm:$0xff]  ;;  %543 = vmatprep.subr.bf16.mxu0 %v1472_v9  ;;  %v1542_v26 = vmov 0.0   ;;  %v1674_v28 = vshrl.u32 %v480_v27, 7  ;;  %vm1543_vm1 = vmmov 0   ;;  %vm650_vm2 = vcmask 1043456  }
   0xf   : > { %v441_v1 = vsel %vm440_vm0, %v1634_v0, 0.0  ;;  %v1480_v15 = vld [vmem:[%s1845_s3] ss:$8 sps:$4 sm:$0xff]   ;;  %1420 = vmatprep.subr.bf16.mxu1 %v1542_v26  ;;  %1422 = vmatprep.mubr.msk.bf16.mxu1 %vm1543_vm1, %v1542_v26  ;;  %vm587_vm3 = vcmask 261120   ;;  %v577_v50 = vand.u32 127, %v480_v27  ;;  %vm634_vm5 = vcmask 64512  }
  0x10   : > { %442 = vadd.xlane.f32.xlu0 %v441_v1  ;;  %v1324_v20 = vld [vmem:[%s1843_s1] ss:$0 sm:$0xff]  ;;  %v482_v29 = vsub.s32 0, %v1674_v28  ;;  %v486_v31 = vsub.s32 1, %v1674_v28  ;;  %v1547_v51 = vmov -1e+30  }
  0x11   : > { %544 = vmatpush1.bf16.msra.mxu0 %v1474_v10  ;;  %v1325_v22 = vld [vmem:[%s1844_s2] ss:$0 sm:$0xff]  ;;  %vm578_vm4 = vcmp.le.s32.totalorder %v577_v50, %v1674_v28  ;;  %v1484_v27 = vld [vmem:[%s1847_s5 + $0x10] sm:$0xff]  }
  0x12   : > { %545 = vmatprep.subr.bf16.mxu0 %v1475_v12  ;;  %v478_v30 = vld [vmem:[%s1846_s4] sm:$0x3]  ;;  %v579_v52 = vsel %vm578_vm4, 0.0, %v1547_v51 }
  0x13   : > { %v483_v32 = vrot.slane %v478_v30, %v482_v29  ;;  %v487_v33 = vrot.slane %v478_v30, %v486_v31 }
  0x15   : > { %546 = vmatpush1.bf16.msra.mxu0 %v1477_v13 }
  0x16   : > { %547 = vmatprep.subr.bf16.mxu0 %v1478_v14 }
  0x19   : > { %548 = vmatpush1.bf16.msra.mxu0 %v1480_v15 }
  0x1a   : > { %1414 = vmatprep.subr.bf16.mxu0 %v1542_v26 }
  0x99   : > { %v443_v2 = vpop.xlane.xlu0 %442 }
  0x9a   : > { %v445_v3 = vmul.f32 0.015625, %v443_v2 }
  0x9c   : > { %v446_v4 = vsub.f32 %v1634_v0, %v445_v3 }
  0x9e   : > { %v447_v5 = vmul.f32 %v446_v4, %v446_v4 }
  0xa0   : > { %v448_v6 = vsel %vm440_vm0, %v447_v5, 0.0 }
  0xa1   : > { %449 = vadd.xlane.f32.xlu0 %v448_v6 }
 0x12a   : > { %v450_v16 = vpop.xlane.xlu0 %449 }
 0x12b   : > { %v451_v17 = vmul.f32 0.015625, %v450_v16 }
 0x12d   : > { %v452_v18 = vadd.f32 1e-05, %v451_v17 }
 0x12f   : > { %1513 = vrsqrt.f32 %v452_v18 }
 0x13c   : > { %v1514_v19 = vpop.eup %1513 }
 0x13d   : > { %v454_v21 = vmul.f32 %v1514_v19, %v446_v4 }
 0x13f   : > { %v461_v23 = vmul.f32 %v1324_v20, %v454_v21 }
 0x141   : > { %v468_v24 = vadd.f32 %v1325_v22, %v461_v23  ;;  %v1481_v22 = vld [vmem:[%s1847_s5 + $0x8] sm:$0xff]  }
 0x143   : > { %v469_v25 = vpack.c.bf16 %v468_v24, %v468_v24  ;;  %v1482_v24 = vld [vmem:[%s1847_s5] sm:$0xff]  }
 0x145   : > { %1334 = vmatmul.mubr.msk.bf16.vlgmr.msra.gmra.mxu0 %vm440_vm0, %v469_v25  ;;  %v1483_v25 = vld [vmem:[%s1847_s5 + $0x18] sm:$0xff]  }
 0x146   : > { %1416 = vmatprep.mubr.msk.bf16.mxu0 %vm1543_vm1, %v1542_v26 }
 0x205   : > { %v567_v34 = vpop.f32.mrf.mxu0 }
 0x206   : > { %v568_v35 = vadd.f32 %v567_v34, %v483_v32 }
 0x207   : > { %v569_v36 = vpop.f32.mrf.mxu0 }
 0x208   : > { %v580_v37 = vmul.f32 0.17677669, %v568_v35  ;;  %v570_v38 = vadd.f32 %v569_v36, %v487_v33  ;;  %v582_v39 = vpack.c.bf16 %v568_v35, %v568_v35 }
 0x209   : > { %v571_v40 = vpop.f32.mrf.mxu0 }
 0x20a   : > { %v581_v41 = vpack.c.bf16 %v580_v37, %v580_v37  ;;  %v583_v42 = vpack.c.bf16 %v570_v38, %v570_v38  ;;  %585 = vrot.lane.b32.xlu1 %v582_v39, %s1544_s22 }
 0x20b   : > { %v572_v43 = vpop.f32.mrf.mxu0 }
 0x20c   : > { %700 = vrot.lane.b32.xlu0 %v581_v41, %s1545_s23  ;;  %v652_v44 = vsel %vm650_vm2, %v583_v42, 0 }
 0x20d   : > { %1421 = vmatpush3.bf16.msra.mxu1 %v652_v44 }
 0x20e   : > { %702 = vrot.lane.b32.xlu1 %v582_v39, %s1546_s24  ;;  %1432 = vmatprep.subr.bf16.mxu1 %v1542_v26 }
 0x27c   : > { %v586_v45 = vpop.permute.xlu1 %585 }
 0x27d   : > { %v592_v46 = vsel %vm587_vm3, %v586_v45, 0 }
 0x27e   : > { %1415 = vmatpush3.bf16.xpose.msra.mxu0 %v592_v46  ;;  %v701_v49 = vpop.permute.xlu0 %700  ;;  %v1345_v46 = vld [vmem:[%s1848_s6] ss:$0 sm:$0xff] }
 0x27f   : > { %1426 = vmatprep.subr.bf16.mxu0 %v1542_v26 }
 0x280   : > { %v703_v47 = vpop.permute.xlu1 %702 }
 0x281   : > { %v708_v48 = vsel %vm587_vm3, %v703_v47, 0 }
 0x285   : > { %1417 = vmatmul.mubr.msk.bf16.vlgmr.msra.gmra.mxu0 %vm587_vm3, %v581_v41 }
 0x286   : > { %1427 = vmatpush3.bf16.xpose.msra.mxu0 %v708_v48  ;;  %1428 = vmatprep.mubr.msk.bf16.mxu0 %vm1543_vm1, %v1542_v26 }
 0x287   : > { %1438 = vmatprep.subr.bf16.mxu0 %v1542_v26 }
 0x28d   : > { %1429 = vmatmul.mubr.msk.bf16.vlgmr.msra.gmra.mxu0 %vm587_vm3, %v701_v49 }
 0x28e   : > { %1442 = vmatprep.mubr.msk.bf16.mxu0 %vm1543_vm1, %v1542_v26  ;;  %1439 = vmatpush3.bf16.msra.mxu0 %v1483_v25  ;;  %v1510_v25 = vld [vmem:[%s1853_s11 + $0x8] sm:$0xff]  }
 0x28f   : > { %1440 = vmatprep.subr.bf16.mxu0 %v1542_v26 }
 0x292   : > { %1441 = vmatpush3.bf16.msra.mxu0 %v1484_v27  ;;  %v1511_v27 = vld [vmem:[%s1853_s11 + $0x40] sm:$0xff]  }
 0x345   : > { %v628_v53 = vpop.f32.mrf.mxu0 }
 0x346   : > { %v629_v54 = vadd.f32 %v628_v53, %v579_v52 }
 0x347   : > { %v1418_v55 = vpop.f32.mrf.mxu0 }
 0x348   : > { %v635_v56 = vsel %vm634_vm5, %v629_v54, -inf }
 0x349   : > { %636 = vmax.xlane.f32.xlu1 %v635_v56  ;;  %v631_v57 = vpop.f32.mrf.mxu0 }
 0x34a   : > { %v1485_v57 = vld [vmem:[%s1851_s9 + $0x30] ss:$8 sps:$4 sm:$0xff]  }
 0x34b   : > { %v1419_v58 = vpop.f32.mrf.mxu0 }
 0x34c   : > { %v1490_v58 = vld [vmem:[%s1851_s9 + $0x24] ss:$8 sps:$4 sm:$0xff]  }
 0x34d   : > { %v744_v59 = vpop.f32.mrf.mxu0 }
 0x34e   : > { %v745_v60 = vadd.f32 %v744_v59, %v579_v52  ;;  %v1488_v59 = vld [vmem:[%s1851_s9 + $0x20] ss:$8 sps:$4 sm:$0xff]  }
 0x34f   : > { %v1430_v61 = vpop.f32.mrf.mxu0 }
 0x350   : > { %v750_v62 = vsel %vm634_vm5, %v745_v60, -inf  ;;  %v1491_v61 = vld [vmem:[%s1851_s9 + $0x10] ss:$8 sps:$4 sm:$0xff]  }
 0x351   : > { %751 = vmax.xlane.f32.xlu0 %v750_v62  ;;  %v747_v63 = vpop.f32.mrf.mxu0  ;;  %v1496_v62 = vld [vmem:[%s1851_s9 + $0x4] ss:$8 sps:$4 sm:$0xff]  }
 0x352   : > { %v1494_v63 = vld [vmem:[%s1851_s9] ss:$8 sps:$4 sm:$0xff]  }
 0x353   : > { %v1431_v1 = vpop.f32.mrf.mxu0 }
 0x3d2   : > { %v637_v2 = vpop.xlane.xlu1 %636 }
 0x3d3   : > { %v638_v3 = vsub.f32 %v629_v54, %v637_v2 }
 0x3d5   : > { %v639_v4 = vmul.f32 1.442695, %v638_v3 }
 0x3d7   : > { %1515 = vpow2.f32 %v639_v4 }
 0x3da   : > { %v752_v5 = vpop.xlane.xlu0 %751 }
 0x3db   : > { %v753_v6 = vsub.f32 %v745_v60, %v752_v5  ;;  %v1493_v60 = vld [vmem:[%s1851_s9 + $0x14] ss:$8 sps:$4 sm:$0xff]   ;;  %v1346_v5 = vld [vmem:[%s1849_s7] ss:$0 sm:$0xff] }
 0x3dd   : > { %v754_v7 = vmul.f32 1.442695, %v753_v6 }
 0x3df   : > { %1517 = vpow2.f32 %v754_v7  ;;  %v1347_v7 = vld [vmem:[%s1850_s8] ss:$0 sm:$0xff] }
 0x3e4   : > { %v1516_v8 = vpop.eup %1515 }
 0x3e5   : > { %v641_v9 = vsel %vm634_vm5, %v1516_v8, 0.0 }
 0x3e6   : > { %642 = vadd.xlane.f32.xlu1 %v641_v9 }
 0x3ec   : > { %v1518_v10 = vpop.eup %1517 }
 0x3ed   : > { %v756_v12 = vsel %vm634_vm5, %v1518_v10, 0.0 }
 0x3ee   : > { %757 = vadd.xlane.f32.xlu1 %v756_v12  ;;  %v1497_v12 = vld [vmem:[%s1853_s11 + $0x78] sm:$0xff]  }
 0x3ff   : > { %763 = vrot.lane.b32.xlu1 %v583_v42, %s1545_s23  ;;  %s435_s23 = scalar_lea.vmem %s1855_s13, %s1322_s27 }
 0x46f   : > { %v643_v13 = vpop.xlane.xlu1 %642 }
 0x470   : > { %1519 = vrcp.f32 %v643_v13  ;;  %v1498_v13 = vld [vmem:[%s1853_s11 + $0x38] sm:$0xff]  }
 0x477   : > { %v758_v14 = vpop.xlane.xlu1 %757 }
 0x478   : > { %1521 = vrcp.f32 %v758_v14  ;;  %v1499_v14 = vld [vmem:[%s1853_s11 + $0x70] sm:$0xff]  }
 0x47b   : > { %v764_v17 = vpop.permute.xlu1 %763 }
 0x47c   : > { %v769_v19 = vsel %vm650_vm2, %v764_v17, 0  ;;  %v1502_v17 = vld [vmem:[%s1853_s11 + $0x28] sm:$0xff]  }
 0x47d   : > { %v1520_v15 = vpop.eup %1519 }
 0x47e   : > { %v645_v16 = vmul.f32 %v1520_v15, %v1516_v8  ;;  %v1500_v15 = vld [vmem:[%s1853_s11 + $0x30] sm:$0xff]  }
 0x480   : > { %v646_v18 = vpack.c.bf16 %v645_v16, %v645_v16  ;;  %v1501_v16 = vld [vmem:[%s1853_s11 + $0x68] sm:$0xff]  }
 0x482   : > { %1423 = vmatmul.mubr.msk.bf16.vlgmr.msra.gmra.mxu1 %vm634_vm5, %v646_v18  ;;  %v1503_v18 = vld [vmem:[%s1853_s11 + $0x60] sm:$0xff]  }
 0x483   : > { %1433 = vmatpush3.bf16.msra.mxu1 %v769_v19  ;;  %1434 = vmatprep.mubr.msk.bf16.mxu1 %vm1543_vm1, %v1542_v26  ;;  %v1504_v19 = vld [vmem:[%s1853_s11 + $0x20] sm:$0xff]  }
 0x484   : > { %1446 = vmatprep.subr.bf16.mxu1 %v1542_v26 }
 0x485   : > { %v1522_v20 = vpop.eup %1521 }
 0x486   : > { %v760_v21 = vmul.f32 %v1522_v20, %v1518_v10  ;;  %v1505_v20 = vld [vmem:[%s1853_s11 + $0x58] sm:$0xff]  }
 0x488   : > { %v761_v23 = vpack.c.bf16 %v760_v21, %v760_v21  ;;  %v1506_v21 = vld [vmem:[%s1853_s11 + $0x18] sm:$0xff]  }
 0x48a   : > { %1435 = vmatmul.mubr.msk.bf16.vlgmr.msra.gmra.mxu1 %vm634_vm5, %v761_v23  ;;  %v1508_v23 = vld [vmem:[%s1853_s11 + $0x10] sm:$0xff]  }
 0x48b   : > { %1447 = vmatpush3.bf16.msra.mxu1 %v1481_v22  ;;  %1450 = vmatprep.mubr.msk.bf16.mxu1 %vm1543_vm1, %v1542_v26  ;;  %v1507_v22 = vld [vmem:[%s1853_s11 + $0x50] sm:$0xff]  }
 0x48c   : > { %1448 = vmatprep.subr.bf16.mxu1 %v1542_v26 }
 0x48f   : > { %1449 = vmatpush3.bf16.msra.mxu1 %v1482_v24  ;;  %v1509_v24 = vld [vmem:[%s1853_s11 + $0x48] sm:$0xff]  }
 0x490   : > { %1392 = vmatprep.subr.bf16.mxu1 %v1497_v12 }
 0x542   : > { %v688_v30 = vpop.f32.mrf.mxu1 }
 0x543   : > { %v694_v32 = vpack.c.bf16 %v688_v30, %v688_v30  ;;  %v1512_v30 = vld [vmem:[%s1853_s11] sm:$0xff]  }
 0x544   : > { %v1424_v33 = vpop.f32.mrf.mxu1 }
 0x545   : > { %1451 = vmatmul.mubr.msk.bf16.vlgmr.msra.gmra.mxu1 %vm587_vm3, %v694_v32  ;;  %v973_v32 = vld [vmem:[%s1852_s10] sm:$0x3] }
 0x546   : > { %v691_v34 = vpop.f32.mrf.mxu1  ;;  %1393 = vmatpush3.bf16.msra.mxu1 %v1498_v13  ;;  %v978_v33 = vrot.slane %v973_v32, %v482_v29 }
 0x547   : > { %1394 = vmatprep.subr.bf16.mxu1 %v1499_v14  ;;  %v982_v34 = vrot.slane %v973_v32, %v486_v31 }
 0x548   : > { %v1425_v35 = vpop.f32.mrf.mxu1 }
 0x54a   : > { %v805_v36 = vpop.f32.mrf.mxu1  ;;  %1395 = vmatpush3.bf16.msra.mxu1 %v1500_v15 }
 0x54b   : > { %v811_v37 = vpack.c.bf16 %v805_v36, %v805_v36  ;;  %1396 = vmatprep.subr.bf16.mxu1 %v1501_v16 }
 0x54c   : > { %v1436_v38 = vpop.f32.mrf.mxu1 }
 0x54d   : > { %1443 = vmatmul.mubr.msk.bf16.vlgmr.msra.gmra.mxu0 %vm587_vm3, %v811_v37 }
 0x54e   : > { %v808_v39 = vpop.f32.mrf.mxu1  ;;  %1060 = vmatprep.mubr.bf16.mxu0 %v1541_v11  ;;  %1397 = vmatpush3.bf16.msra.mxu1 %v1502_v17 }
 0x54f   : > { %1398 = vmatprep.subr.bf16.mxu1 %v1503_v18 }
 0x550   : > { %v1437_v26 = vpop.f32.mrf.mxu1 }
 0x552   : > { %1399 = vmatpush3.bf16.msra.mxu1 %v1504_v19 }
 0x553   : > { %1400 = vmatprep.subr.bf16.mxu1 %v1505_v20 }
 0x556   : > { %1401 = vmatpush3.bf16.msra.mxu1 %v1506_v21 }
 0x557   : > { %1402 = vmatprep.subr.bf16.mxu1 %v1507_v22 }
 0x55a   : > { %1403 = vmatpush3.bf16.msra.mxu1 %v1508_v23 }
 0x55b   : > { %1404 = vmatprep.subr.bf16.mxu1 %v1509_v24 }
 0x55e   : > { %1405 = vmatpush3.bf16.msra.mxu1 %v1510_v25 }
 0x55f   : > { %1406 = vmatprep.subr.bf16.mxu1 %v1511_v27 }
 0x562   : > { %1407 = vmatpush3.bf16.msra.mxu1 %v1512_v30 }
 0x605   : > { %v920_v40 = vpop.f32.mrf.mxu1 }
 0x607   : > { %v1452_v41 = vpop.f32.mrf.mxu1 }
 0x609   : > { %v923_v42 = vpop.f32.mrf.mxu1 }
 0x60b   : > { %v1453_v43 = vpop.f32.mrf.mxu1 }
 0x60d   : > { %v865_v44 = vpop.f32.mrf.mxu0 }
 0x60e   : > { %v921_v45 = vadd.f32 %v920_v40, %v865_v44 }
 0x60f   : > { %v1444_v47 = vpop.f32.mrf.mxu0 }
 0x610   : > { %v926_v48 = vadd.f32 %v921_v45, %v1634_v0  ;;  %v1487_v0 = vld [vmem:[%s1851_s9 + $0x34] ss:$8 sps:$4 sm:$0xff]  }
 0x611   : > { %v868_v49 = vpop.f32.mrf.mxu0  ;;  %1036 = vmatprep.subr.bf16.mxu0 %v1487_v0 }
 0x612   : > { %v1737_v50 = vadd.f32 %v1345_v46, %v926_v48  ;;  %1037 = vmatpush1.bf16.msra.mxu0 %v1485_v57 }
 0x613   : > { %v1445_v51 = vpop.f32.mrf.mxu0  ;;  %1038 = vmatprep.subr.bf16.mxu0 %v1490_v58 }
 0x614   : > { %v937_v11 = vsel %vm440_vm0, %v1737_v50, 0.0 }
 0x615   : > { %938 = vadd.xlane.f32.xlu0 %v937_v11 }
 0x616   : > { %1039 = vmatpush1.bf16.msra.mxu0 %v1488_v59 }
 0x617   : > { %1040 = vmatprep.subr.bf16.mxu0 %v1493_v60 }
 0x61a   : > { %1041 = vmatpush1.bf16.msra.mxu0 %v1491_v61 }
 0x61b   : > { %1042 = vmatprep.subr.bf16.mxu0 %v1496_v62 }
 0x61e   : > { %1043 = vmatpush1.bf16.msra.mxu0 %v1494_v63 }
 0x69e   : > { %v939_v52 = vpop.xlane.xlu0 %938 }
 0x69f   : > { %v940_v53 = vmul.f32 0.015625, %v939_v52  ;;  %v1359_v52 = vld [vmem:[%s1854_s12] ss:$0 sm:$0xff] }
 0x6a1   : > { %v941_v54 = vsub.f32 %v1737_v50, %v940_v53 }
 0x6a3   : > { %v942_v55 = vmul.f32 %v941_v54, %v941_v54 }
 0x6a5   : > { %v943_v56 = vsel %vm440_vm0, %v942_v55, 0.0 }
 0x6a6   : > { %944 = vadd.xlane.f32.xlu0 %v943_v56 }
 0x72f   : > { %v945_v1 = vpop.xlane.xlu0 %944 }
 0x730   : > { %v946_v2 = vmul.f32 0.015625, %v945_v1 }
 0x732   : > { %v947_v3 = vadd.f32 1e-05, %v946_v2 }
 0x734   : > { %1523 = vrsqrt.f32 %v947_v3 }
 0x741   : > { %v1524_v4 = vpop.eup %1523 }
 0x742   : > { %v949_v6 = vmul.f32 %v1524_v4, %v941_v54 }
 0x744   : > { %v956_v8 = vmul.f32 %v1346_v5, %v949_v6 }
 0x746   : > { %v963_v9 = vadd.f32 %v1347_v7, %v956_v8 }
 0x748   : > { %v964_v10 = vpack.c.bf16 %v963_v9, %v963_v9 }
 0x74a   : > { %1356 = vmatmul.mubr.msk.bf16.vlgmr.msra.gmra.mxu0 %vm440_vm0, %v964_v10 }
 0x80a   : > { %v1062_v35 = vpop.f32.mrf.mxu0 }
 0x80b   : > { %v1063_v36 = vadd.f32 %v1062_v35, %v978_v33 }
 0x80c   : > { %v1064_v37 = vpop.f32.mrf.mxu0 }
 0x80d   : > { %v1357_v38 = vmul.f32 -1.702, %v1063_v36  ;;  %v1065_v39 = vadd.f32 %v1064_v37, %v982_v34 }
 0x80e   : > { %v1066_v26 = vpop.f32.mrf.mxu0 }
 0x80f   : > { %v1073_v40 = vmul.f32 1.442695, %v1357_v38  ;;  %v1358_v41 = vmul.f32 -1.702, %v1065_v39 }
 0x810   : > { %v1067_v42 = vpop.f32.mrf.mxu0 }
 0x811   : > { %1525 = vpow2.f32 %v1073_v40  ;;  %v1075_v43 = vmul.f32 1.442695, %v1358_v41 }
 0x813   : > { %1527 = vpow2.f32 %v1075_v43 }
 0x81e   : > { %v1526_v44 = vpop.eup %1525 }
 0x81f   : > { %v1077_v45 = vadd.f32 1.0, %v1526_v44 }
 0x820   : > { %v1528_v46 = vpop.eup %1527 }
 0x821   : > { %1529 = vrcp.f32 %v1077_v45  ;;  %v1078_v29 = vadd.f32 1.0, %v1528_v46 }
 0x823   : > { %1531 = vrcp.f32 %v1078_v29 }
 0x82e   : > { %v1530_v28 = vpop.eup %1529 }
 0x82f   : > { %v1083_v47 = vmul.f32 %v1530_v28, %v1063_v36 }
 0x830   : > { %v1532_v31 = vpop.eup %1531 }
 0x831   : > { %v1084_v48 = vmul.f32 %v1532_v31, %v1065_v39  ;;  %v1085_v51 = vpack.c.bf16 %v1083_v47, %v1083_v47 }
 0x833   : > { %v1086_v49 = vpack.c.bf16 %v1084_v48, %v1084_v48 }
 0x835   : > { %1254 = vmatprep.mubr.bf16.mxu1 %v1086_v49 }
 0x836   : > { %1255 = vmatmul.mubr.bf16.vlgmr.msra.gmra.mxu1 %v1085_v51 }
 0x8f6   : > { %v1408_v11 = vpop.f32.mrf.mxu1 }
 0x8f8   : > { %v1409_v53 = vpop.f32.mrf.mxu1 }
 0x8f9   : > { %v1410_v54 = vadd.f32 %v1409_v53, %v1408_v11 }
 0x8fa   : > { %v1411_v55 = vpop.f32.mrf.mxu1 }
 0x8fb   : > { %v1257_v56 = vadd.f32 %v1410_v54, %v1359_v52 }
 0x8fc   : > { %v1412_v0 = vpop.f32.mrf.mxu1 }
 0x8fd   : > { %v1262_v57 = vadd.f32 %v1257_v56, %v1737_v50 }
 0x8ff   : > { %1263 = vst.msk [vmem:[%s435_s23] sm:$0xff] %vm440_vm0, %v1262_v57 }
 0x900 PF: > { %s23_s25 = sadd.s32 1, %s1539_s25  }
 0x901   : > { %p20_p4 = scmp.ge.s32.totalorder %s23_s25, 4  }
 0x903   :  { %22 = sbr.rel (!%p20_p4) target bundleno = 1 (0x1), region = 102 }

</bundles_post_ra>
